<compile_context>
chip_gen: v6e
topology: v6e:2x2x1
jax: 0.10.0
libtpu: 0.0.40
codegen_flags: <defaults>
</compile_context>

<pallas_src>
import functools

import jax
import jax.numpy as jnp
from jax.experimental import pallas as pl
from jax.experimental.pallas import tpu as pltpu

BN_EPS = 1e-5     # nn.BatchNorm2d default eps
CPAD = 128        # lane-dense channel padding
HW = 64           # fixed 8x8 board
N_TAPS = 9        # 3x3 conv


# --------------------------- roll sign probe --------------------------------

_ROLL_SIGN_CACHE = {}


def _roll_sign() -> int:
    """+1 if pltpu.roll matches jnp.roll (result[i] = x[i - shift]), else -1.

    Detected once with a tiny probe kernel.  Called eagerly (outside jit) from
    prepare_kernel_params so the kernels can bake static shift amounts.
    """
    if "s" not in _ROLL_SIGN_CACHE:
        def probe(x_ref, o_ref):
            o_ref[...] = pltpu.roll(x_ref[...], shift=1, axis=0)

        x = jnp.broadcast_to(jnp.arange(8, dtype=jnp.float32)[:, None],
                             (8, 128))
        out = pl.pallas_call(
            probe, out_shape=jax.ShapeDtypeStruct((8, 128), jnp.float32))(x)
        # jnp.roll semantics -> out[1] == x[0] == 0 ; opposite -> out[1] == 2.
        _ROLL_SIGN_CACHE["s"] = 1 if float(out[1, 0]) == 0.0 else -1
    return _ROLL_SIGN_CACHE["s"]


def _vmem_limit_bytes(resident_bytes: int) -> int:
    # 2x headroom on the actual VMEM-resident buffers, floor 32 MiB, capped so
    # it stays within v7x's 64 MiB physical VMEM.
    return int(min(64 << 20, max(32 << 20, 2 * resident_bytes + (8 << 20))))


# ----------------------------- Pallas kernels -------------------------------

def conv_block_kernel(x_ref, m_ref, w_ref, b_ref, g_ref, beta_ref, o_ref,
                      act_ref, taps_ref, *, roll_sign):
    """One grid step == one Conv(3x3,'same') + bias + BatchNorm + ReLU block.

    x:    (B*64, CPAD) f32    zero-padded input activations (read at block 0)
    m:    (9, B*64, 1) f32    per-tap board-edge validity masks
    w:    (9*CPAD, CPAD) bf16 fused per-block tap weights (streamed per block)
    b/g/beta: (1, CPAD) f32   conv bias / BN gamma / BN beta (streamed)
    o:    (B*64, CPAD) f32    written once at the last block
    act:  (B*64, CPAD) f32    VMEM scratch carrying activations across blocks
    taps: (B*64, 9*CPAD) bf16 VMEM staging for the fused K=9*CPAD matmul
    """
    i = pl.program_id(0)

    @pl.when(i == 0)
    def _():
        act_ref[...] = x_ref[...]

    act = act_ref[...]                           # (rows, CPAD) f32
    rows = act.shape[0]

    # 9 spatial taps: roll along the (b,h,w) row axis (XLU) + edge mask (VPU),
    # staged as bf16 into the taps scratch.
    for d in range(N_TAPS):                      # unrolled at trace time
        off = (d // 3 - 1) * 8 + (d % 3 - 1)     # row offset of the tap source
        if off == 0:
            tap = act                            # center tap: no roll, no mask
        else:
            rolled = pltpu.roll(act, shift=(-roll_sign * off) % rows, axis=0)
            tap = rolled * m_ref[d]              # (rows,CPAD) * (rows,1)
        taps_ref[:, d * CPAD:(d + 1) * CPAD] = tap.astype(jnp.bfloat16)

    # Single fused matmul per block: (rows, 9*CPAD) @ (9*CPAD, CPAD), bf16 in,
    # f32 accumulate.
    y = jnp.dot(taps_ref[...], w_ref[...], preferred_element_type=jnp.float32)
    y = y + b_ref[...]                           # conv bias

    # BatchNorm (training-mode batch stats over all B*H*W rows) + ReLU, f32.
    mean = jnp.mean(y, axis=0, keepdims=True)
    cent = y - mean
    var = jnp.mean(cent * cent, axis=0, keepdims=True)     # biased variance
    y = cent * jax.lax.rsqrt(var + BN_EPS) * g_ref[...] + beta_ref[...]
    out = jnp.maximum(y, 0.0)

    act_ref[...] = out

    @pl.when(i == pl.num_programs(0) - 1)
    def _():
        o_ref[...] = out                          # lane-dense f32 store


def mlp_kernel(x_ref, w1_ref, b1_ref, w2_ref, b2_ref, o_ref, h_ref):
    """Linear -> ReLU -> Linear -> sigmoid.

    grid = (output-N tile j [parallel], K tile k [arbitrary]).  The hidden
    activation is accumulated in an f32 VMEM scratch over k; the output tile
    is produced at the last k step.  Matmul operands are bf16, epilogues f32.
    """
    k = pl.program_id(1)

    @pl.when(k == 0)
    def _():
        h_ref[...] = jnp.zeros_like(h_ref)

    h_ref[...] += jnp.dot(x_ref[...], w1_ref[...],
                          preferred_element_type=jnp.float32)

    @pl.when(k == pl.num_programs(1) - 1)
    def _():
        h = jnp.maximum(h_ref[...] + b1_ref[...], 0.0).astype(jnp.bfloat16)
        y = jnp.dot(h, w2_ref[...], preferred_element_type=jnp.float32)
        y = y + b2_ref[...]
        o_ref[...] = 1.0 / (1.0 + jnp.exp(-y))    # sigmoid, f32 epilogue


# ------------------------------ pallas_call wrappers ------------------------

def conv_stack(x_pad, masks, w, b, g, beta):
    rows = x_pad.shape[0]
    n_blocks = w.shape[0]
    kernel = functools.partial(conv_block_kernel, roll_sign=_roll_sign())
    vmem_need = (
        3 * rows * CPAD * 4                       # x + act scratch + output
        + N_TAPS * rows * 128 * 4                 # masks (lane-padded f32)
        + rows * N_TAPS * CPAD * 2                # taps scratch (bf16)
        + 2 * (N_TAPS * CPAD * CPAD * 2 + 3 * CPAD * 4))  # streamed params x2
    return pl.pallas_call(
        kernel,
        out_shape=jax.ShapeDtypeStruct((rows, CPAD), jnp.float32),
        grid_spec=pltpu.PrefetchScalarGridSpec(
            num_scalar_prefetch=0,
            grid=(n_blocks,),
            in_specs=[
                pl.BlockSpec((rows, CPAD), lambda i: (0, 0)),
                pl.BlockSpec((N_TAPS, rows, 1), lambda i: (0, 0, 0)),
                pl.BlockSpec((None, N_TAPS * CPAD, CPAD), lambda i: (i, 0, 0)),
                pl.BlockSpec((None, 1, CPAD), lambda i: (i, 0, 0)),
                pl.BlockSpec((None, 1, CPAD), lambda i: (i, 0, 0)),
                pl.BlockSpec((None, 1, CPAD), lambda i: (i, 0, 0)),
            ],
            out_specs=pl.BlockSpec((rows, CPAD), lambda i: (0, 0)),
            scratch_shapes=[
                pltpu.VMEM((rows, CPAD), jnp.float32),
                pltpu.VMEM((rows, N_TAPS * CPAD), jnp.bfloat16),
            ],
        ),
        compiler_params=pltpu.CompilerParams(
            dimension_semantics=("arbitrary",),
            vmem_limit_bytes=_vmem_limit_bytes(vmem_need)),
    )(x_pad, masks, w, b, g, beta)


def mlp(flat, w1, b1, w2, b2):
    B, K1 = flat.shape
    NH = w1.shape[1]
    N = w2.shape[1]
    TK = 512 if K1 % 512 == 0 else K1
    TN = 512 if N % 512 == 0 else N
    nk, nj = K1 // TK, N // TN
    vmem_need = (2 * (B * TK * 2 + TK * NH * 2 + NH * TN * 2
                      + TN * 4 + B * TN * 4)
                 + NH * 4 + B * NH * 4)
    return pl.pallas_call(
        mlp_kernel,
        out_shape=jax.ShapeDtypeStruct((B, N), jnp.float32),
        grid_spec=pltpu.PrefetchScalarGridSpec(
            num_scalar_prefetch=0,
            grid=(nj, nk),
            in_specs=[
                pl.BlockSpec((B, TK), lambda j, k: (0, k)),
                pl.BlockSpec((TK, NH), lambda j, k: (k, 0)),
                pl.BlockSpec((1, NH), lambda j, k: (0, 0)),
                pl.BlockSpec((NH, TN), lambda j, k: (0, j)),
                pl.BlockSpec((1, TN), lambda j, k: (0, j)),
            ],
            out_specs=pl.BlockSpec((B, TN), lambda j, k: (0, j)),
            scratch_shapes=[pltpu.VMEM((B, NH), jnp.float32)],
        ),
        compiler_params=pltpu.CompilerParams(
            dimension_semantics=("parallel", "arbitrary"),
            vmem_limit_bytes=_vmem_limit_bytes(vmem_need)),
    )(flat, w1, b1, w2, b2)


# ------------------------------ JAX glue ------------------------------------

def build_tap_masks(batch):
    """(9, B*64, 1) {0,1} masks: 1 iff tap d's source square is on the board.

    Rows are (b, h, w) row-major; |offset| <= 9 < 64 so any batch-boundary
    wrap of the roll is already covered by the h/w validity test.
    """
    rows = batch * HW
    r = jnp.arange(rows)
    h, w = (r % HW) // 8, r % 8
    masks = []
    for dh in range(3):
        for dw in range(3):
            hi, wi = h + dh - 1, w + dw - 1
            valid = (hi >= 0) & (hi < 8) & (wi >= 0) & (wi < 8)
            masks.append(valid.astype(jnp.float32)[:, None])
    return jnp.stack(masks)


def init_params(key, n_blocks, n_channels, n_hidden, filter_size=3):
    """PyTorch-style parameters (conv weights stored as (kh, kw, cin, cout))."""
    params = {"conv": []}
    for i in range(n_blocks):
        cin = 7 if i == 0 else n_channels
        key, k1, k2, k3, k4 = jax.random.split(key, 5)
        w = 0.1 * jax.random.normal(
            k1, (filter_size, filter_size, cin, n_channels), jnp.float32)
        b = 0.1 * jax.random.normal(k2, (n_channels,), jnp.float32)
        gamma = 1.0 + 0.1 * jax.random.normal(k3, (n_channels,), jnp.float32)
        beta = 0.1 * jax.random.normal(k4, (n_channels,), jnp.float32)
        params["conv"].append((w, b, gamma, beta))
    c = n_channels if n_blocks > 0 else 7
    key, k1, k2, k3, k4 = jax.random.split(key, 5)
    params["w1"] = 0.05 * jax.random.normal(k1, (c * HW, n_hidden), jnp.float32)
    params["b1"] = 0.05 * jax.random.normal(k2, (n_hidden,), jnp.float32)
    params["w2"] = 0.05 * jax.random.normal(k3, (n_hidden, 64 * 64), jnp.float32)
    params["b2"] = 0.05 * jax.random.normal(k4, (64 * 64,), jnp.float32)
    return params


def prepare_kernel_params(params, batch):
    """One-time offline padding / packing into kernel-friendly layouts."""
    assert params["conv"], "this packaging assumes n_blocks >= 1"
    _roll_sign()                       # warm the probe cache eagerly (not in jit)

    n_channels = params["conv"][0][0].shape[-1]
    assert n_channels <= CPAD

    w_l, b_l, g_l, bt_l = [], [], [], []
    for (w, b, gamma, beta) in params["conv"]:
        kh, kw, cin, cout = w.shape
        wp = jnp.zeros((kh * kw, CPAD, CPAD), jnp.float32)
        wp = wp.at[:, :cin, :cout].set(w.reshape(kh * kw, cin, cout))
        w_l.append(wp.reshape(kh * kw * CPAD, CPAD))      # fused-tap layout

        def pad_vec(v, cout=cout):
            return jnp.zeros((1, CPAD), jnp.float32).at[0, :cout].set(v)

        b_l.append(pad_vec(b))
        g_l.append(pad_vec(gamma))
        bt_l.append(pad_vec(beta))

    nh = params["w1"].shape[1]
    # PyTorch flattens NCHW (feature = c*64 + hw); the kernel flattens as
    # (hw, c) row-major -> permute w1's rows once offline (no padding waste).
    w1r = params["w1"].reshape(n_channels, HW, nh)
    w1p = jnp.transpose(w1r, (1, 0, 2)).reshape(HW * n_channels, nh)

    return {
        "masks": build_tap_masks(batch),                      # (9, B*64, 1)
        "w_conv": jnp.stack(w_l).astype(jnp.bfloat16),        # (nb, 9*CPAD, CPAD)
        "b_conv": jnp.stack(b_l),                             # (nb, 1, CPAD)
        "g_conv": jnp.stack(g_l),
        "beta_conv": jnp.stack(bt_l),
        "w1p": w1p.astype(jnp.bfloat16),                      # (64*C, nh)
        "b1": params["b1"].reshape(1, nh).astype(jnp.float32),
        "w2": params["w2"].astype(jnp.bfloat16),              # (nh, 4096)
        "b2": params["b2"].reshape(1, -1).astype(jnp.float32),
    }


def chess_model_forward(x_nchw, kp):
    B, cin = x_nchw.shape[0], x_nchw.shape[1]
    # NCHW -> rows (b,h,w) x channels, zero-padded to 128 lanes (tiny, one-off).
    x = jnp.transpose(x_nchw, (0, 2, 3, 1)).reshape(B * HW, cin)
    x = jnp.pad(x, ((0, 0), (0, CPAD - cin)))
    act = conv_stack(x, kp["masks"], kp["w_conv"], kp["b_conv"],
                     kp["g_conv"], kp["beta_conv"])           # (B*64, CPAD)
    nc = kp["w1p"].shape[0] // HW                             # static
    # Drop padded lanes so the MLP's K has no redundant zeros; the NCHW
    # flatten order is already folded into w1p.
    flat = act[:, :nc].reshape(B, HW * nc).astype(jnp.bfloat16)
    return mlp(flat, kp["w1p"], kp["b1"], kp["w2"], kp["b2"])


def reference_forward(x_nchw, params):
    """Pure-JAX/XLA f32 reference mirroring the PyTorch module semantics."""
    x = x_nchw
    for (w, b, gamma, beta) in params["conv"]:
        y = jax.lax.conv_general_dilated(
            x, w, window_strides=(1, 1), padding="SAME",
            dimension_numbers=("NCHW", "HWIO", "NCHW"))
        y = y + b[None, :, None, None]
        mean = jnp.mean(y, axis=(0, 2, 3), keepdims=True)
        var = jnp.mean((y - mean) ** 2, axis=(0, 2, 3), keepdims=True)
        y = (y - mean) * jax.lax.rsqrt(var + BN_EPS) * gamma[None, :, None, None] \
            + beta[None, :, None, None]
        x = jnp.maximum(y, 0.0)
    flat = x.reshape(x.shape[0], -1)                          # NCHW flatten
    h = jnp.maximum(flat @ params["w1"] + params["b1"], 0.0)
    return jax.nn.sigmoid(h @ params["w2"] + params["b2"])


if __name__ == "__main__":
    # Board is fixed 8x8 with 7 input planes; output fixed at 64*64 = 4096.
    # Shrink the free hyper-parameters (n_blocks/n_channels/n_hidden) for demo.
    n_blocks, n_channels, n_hidden = 2, 16, 128
    key = jax.random.PRNGKey(0)
    key, xk = jax.random.split(key)
    x = jax.random.normal(xk, (2, 7, 8, 8), jnp.float32)      # NCHW like PyTorch
    params = init_params(key, n_blocks, n_channels, n_hidden)
    kp = prepare_kernel_params(params, batch=x.shape[0])

    fwd = jax.jit(chess_model_forward)
    out = jax.block_until_ready(fwd(x, kp))
    ref = reference_forward(x, params)

    assert out.shape == (2, 64 * 64), out.shape
    # bf16 matmul operands (f32 accumulation) vs the all-f32 reference.
    assert float(jnp.max(jnp.abs(out - ref))) < 1e-2
    print("KERNEL_OK")
</pallas_src>

<mosaic_0001>
module attributes {stable_mosaic.version = 11 : i64} {
  func.func @probe(%arg0: memref<8x128xf32, #tpu.memory_space<vmem>>, %arg1: memref<8x128xf32, #tpu.memory_space<vmem>>) attributes {dimension_semantics = [], scalar_prefetch = 0 : i64, scratch_operands = 0 : i64, tpu.core_type = #tpu.core_type<tc>} {
    %c0 = arith.constant 0 : index
    %c0_0 = arith.constant 0 : index
    %0 = vector.load %arg0[%c0, %c0_0] : memref<8x128xf32, #tpu.memory_space<vmem>>, vector<8x128xf32>
    %c1_i32 = arith.constant 1 : i32
    %1 = tpu.dynamic_rotate %0 by %c1_i32 dim 0 : vector<8x128xf32>, i32 -> vector<8x128xf32>
    %c0_1 = arith.constant 0 : index
    %c0_2 = arith.constant 0 : index
    %2 = vector.load %arg1[%c0_1, %c0_2] : memref<8x128xf32, #tpu.memory_space<vmem>>, vector<8x128xf32>
    tpu.vector_store %arg1[%c0_1, %c0_2], %1 {strides = array<i32>} : memref<8x128xf32, #tpu.memory_space<vmem>>, vector<8x128xf32>,
    return
  }
}

</mosaic_0001>

<bundles_post_ra>
// kernel: tpu_custom_call.1
= control target key start
LH: loop header
LB: loop body
LE: loop exit
PB: predicated region body
PF: predicated region fallthrough
CT: control target
= control target key end

     0   :  { %6 = vsyncpa [#allocation3], 0  ;;  %s103_s0 = inlined_call_operand.hbm [shape: f32[8,128], index: 0, kind: input, shape index: {}]   ;;  %s104_s1 = inlined_call_operand.hbm [shape: f32[8,128], index: 1, kind: output, shape index: {}]  }
   0x1   :  { %7 = vsyncpa [#allocation4], 0  ;;  %s85_s6 = smov [#allocation2]  }
   0x2   :  { %s14_s7 = sshll.u32 %s85_s6, 4  ;;  %s15_s7 = int_to_ptr.vmem [resolvable:$true] %s14_s7 }
   0x3   :  { %s49_s8 = scalar_lea.vmem %s15_s7, 128  ;;  %p54_p1 = scmp.lt.s32.totalorder %s15_s7, %s15_s7 }
   0x4   :  { %p50_p0 = scmp.ne.s32.totalorder %s15_s7, %s49_s8  ;;  %p55_p2 = scmp.lt.s32.totalorder %s49_s8, %s49_s8 }
   0x6   :  { %p56_p3 = por %p55_p2, %p54_p1 }
   0x8   :  { %p57_p4 = pnand %p56_p3, %p50_p0 }
   0xa   :  { %60 = shalt.err (!%p57_p4)
}
   0xb   :  { %17 = dma.hbm_to_vmem [thread:$0]  %s103_s0, 128, %s15_s7, [#allocation3]  }
   0xc   :  { %81 = dma.done.wait [#allocation3], 128  }
   0xd   :  { %82 = vsyncadd [#allocation3], 4294967168  ;;  %s86_s11 = smov [#allocation5]   ;;  %v21_v0 = vld [vmem:[#allocation2] sm:$0xff] }
   0xe   :  { %s30_s12 = sshll.u32 %s86_s11, 4  ;;  %v22_v1 = vrot.slane %v21_v0, 7  ;;  %s31_s12 = int_to_ptr.vmem [resolvable:$true] %s30_s12 }
   0xf   :  { %s61_s13 = scalar_lea.vmem %s31_s12, 128  ;;  %p66_p6 = scmp.lt.s32.totalorder %s31_s12, %s31_s12 }
  0x10   :  { %23 = vst [vmem:[#allocation5] sm:$0xff] %v22_v1  ;;  %p62_p5 = scmp.ne.s32.totalorder %s31_s12, %s61_s13  ;;  %p67_p7 = scmp.lt.s32.totalorder %s61_s13, %s61_s13 }
  0x12   :  { %p68_p8 = por %p67_p7, %p66_p6 }
  0x14   :  { %p69_p9 = pnand %p68_p8, %p62_p5 }
  0x16   :  { %72 = shalt.err (!%p69_p9)
}
  0x17   :  { %33 = dma.vmem_to_hbm [thread:$0]  %s31_s12, 128, %s104_s1, [#allocation4]  }
  0x18   :  { %83 = dma.done.wait [#allocation4], 128  }
  0x19   :  { %84 = vsyncadd [#allocation4], 4294967168 }
  0x1a   :  { %37 = vsyncpa [#allocation3], 1 }
  0x1b   :  { %38 = vsyncpa [#allocation4], 1 }

</bundles_post_ra>
